<compile_context>
chip_gen: v5e
topology: v5e:2x2
jax: 0.10.0
libtpu: 0.0.40
codegen_flags: <defaults>
</compile_context>

<pallas_src>
import math
import functools

import jax
import jax.numpy as jnp
from jax import lax
from jax.experimental import pallas as pl
from jax.experimental.pallas import tpu as pltpu


def _pos_embed_sine_kernel(*refs, feat, fold):
    """refs = (x_0, ..., x_{fold-1}, inv_dim_t, phase, out).

    x_r:   (T, 1)   cumsum value of flattened position fold*j + r, for output row j.
    inv:   (1, FL)  1/dim_t tiled `fold` times   (FL = fold * feat).
    phase: (1, FL)  0.0 for sin lanes, pi/2 for cos lanes  (cos t == sin(t + pi/2)).
    out:   (T, FL)  folded positional embedding block.
    """
    x_refs = refs[:fold]
    inv_ref, ph_ref, out_ref = refs[fold], refs[fold + 1], refs[fold + 2]
    T, FL = out_ref.shape

    # Route each folded position's scalar to its 'feat'-wide lane segment.
    x2 = jnp.broadcast_to(x_refs[0][...], (T, FL))
    if fold > 1:
        lane = lax.broadcasted_iota(jnp.int32, (T, FL), 1)
        for r in range(1, fold):
            x2 = jnp.where(lane >= r * feat,
                           jnp.broadcast_to(x_refs[r][...], (T, FL)),
                           x2)

    # One multiply + one add + one sin per output element, all lane-dense.
    out_ref[...] = jnp.sin(x2 * inv_ref[...] + ph_ref[...])


def _pick_tile(n, target):
    """Largest multiple-of-8 divisor of n that is <= target, else n (full dim)."""
    if n <= target:
        return n
    t = (target // 8) * 8
    while t >= 8:
        if n % t == 0:
            return t
        t -= 8
    return n


def position_embedding_sine(x, mask, *, num_pos_feats=64, temperature=10000,
                            normalize=False, scale=None, tile_target=2048):
    """JAX/Pallas equivalent of PositionEmbeddingSine.forward.

    Args:
        x:    (B, L, d) array (unused for the math, kept for signature parity).
        mask: (B, L) array, 1 for valid positions.
    Returns:
        (B, L, num_pos_feats) float32 positional embedding.
    """
    del x  # only mask drives the computation, as in the reference module
    if scale is not None and normalize is False:
        raise ValueError("normalize should be True if scale is passed")
    if scale is None:
        scale = 2 * math.pi

    B, L = mask.shape
    F = num_pos_feats

    # --- cheap O(B*L) prep in the wrapper (feeds the kernel) -------------------
    x_embed = jnp.cumsum(mask.astype(jnp.float32), axis=1)          # (B, L)
    if normalize:
        eps = 1e-6
        x_embed = x_embed / (x_embed[:, -1:] + eps) * jnp.float32(scale)

    # --- frequency / phase tables (hoisted out of the kernel) ------------------
    k = jnp.arange(F, dtype=jnp.float32)
    dim_t = jnp.float32(temperature) ** (2.0 * jnp.floor(k / 2.0) / jnp.float32(F))
    inv_dim_t = 1.0 / dim_t                                          # (F,)
    phase = jnp.where(jnp.arange(F) % 2 == 0,
                      jnp.float32(0.0), jnp.float32(math.pi / 2.0)).astype(jnp.float32)

    # --- lane folding so the kernel's last dim is a multiple of 128 ------------
    N = B * L
    if F % 128 == 0:
        fold = 1
    elif 128 % F == 0 and N % (128 // F) == 0:
        fold = 128 // F
    else:
        fold = 1                                                     # fallback: masked stores
    FL = F * fold
    N2 = N // fold

    inv2 = jnp.tile(inv_dim_t, fold).reshape(1, FL)
    ph2 = jnp.tile(phase, fold).reshape(1, FL)

    # column r holds flattened positions with (n % fold) == r
    xflat = x_embed.reshape(N2, fold)
    xs = [xflat[:, r:r + 1] for r in range(fold)]                    # each (N2, 1)

    TILE = _pick_tile(N2, tile_target)
    grid = (N2 // TILE,)

    kernel = functools.partial(_pos_embed_sine_kernel, feat=F, fold=fold)

    in_specs = ([pl.BlockSpec((TILE, 1), lambda t: (t, 0)) for _ in range(fold)]
                + [pl.BlockSpec((1, FL), lambda t: (0, 0)),
                   pl.BlockSpec((1, FL), lambda t: (0, 0))])

    out2 = pl.pallas_call(
        kernel,
        out_shape=jax.ShapeDtypeStruct((N2, FL), jnp.float32),
        grid=grid,
        in_specs=in_specs,
        out_specs=pl.BlockSpec((TILE, FL), lambda t: (t, 0)),
        compiler_params=pltpu.CompilerParams(dimension_semantics=("parallel",)),
    )(*xs, inv2, ph2)

    # (N2, fold*F) -> (B, L, F): pure contiguous reshape, free in XLA.
    return out2.reshape(B, L, F)


def _reference(mask, num_pos_feats=64, temperature=10000, normalize=False,
               scale=2 * math.pi):
    """Pure-JAX reference mirroring the PyTorch forward, for sanity checking."""
    x_embed = jnp.cumsum(mask.astype(jnp.float32), axis=1)
    if normalize:
        eps = 1e-6
        x_embed = x_embed / (x_embed[:, -1:] + eps) * scale
    dim_t = jnp.arange(num_pos_feats, dtype=jnp.float32)
    dim_t = temperature ** (2 * jnp.floor(dim_t / 2) / num_pos_feats)
    pos_x = x_embed[:, :, None] / dim_t
    pos_x = jnp.stack((jnp.sin(pos_x[:, :, 0::2]),
                       jnp.cos(pos_x[:, :, 1::2])), axis=3)
    return pos_x.reshape(pos_x.shape[0], pos_x.shape[1], -1)


if __name__ == "__main__":
    key = jax.random.PRNGKey(0)
    B, L, d, F = 2, 8, 32, 64

    kx, km = jax.random.split(key)
    x = jax.random.normal(kx, (B, L, d), dtype=jnp.float32)
    # Deterministic mask: 1 for valid positions, trailing zeros per batch row.
    lengths = jnp.array([L, L - 3], dtype=jnp.int32)
    mask = (jnp.arange(L)[None, :] < lengths[:, None]).astype(jnp.float32)

    # non-normalized path
    pos = position_embedding_sine(x, mask, num_pos_feats=F)
    pos = jax.block_until_ready(pos)
    ref = _reference(mask, num_pos_feats=F)
    assert pos.shape == (B, L, F)
    assert jnp.allclose(pos, ref, atol=2e-5, rtol=2e-5), \
        float(jnp.max(jnp.abs(pos - ref)))

    # normalized path
    pos_n = position_embedding_sine(x, mask, num_pos_feats=F, normalize=True)
    pos_n = jax.block_until_ready(pos_n)
    ref_n = _reference(mask, num_pos_feats=F, normalize=True)
    assert jnp.allclose(pos_n, ref_n, atol=2e-5, rtol=2e-5), \
        float(jnp.max(jnp.abs(pos_n - ref_n)))

    print("KERNEL_OK")
</pallas_src>

<mosaic_0001>
module attributes {stable_mosaic.version = 11 : i64} {
  func.func @_pos_embed_sine_kernel(%arg0: i32, %arg1: memref<8x1xf32, #tpu.memory_space<vmem>>, %arg2: memref<8x1xf32, #tpu.memory_space<vmem>>, %arg3: memref<1x128xf32, #tpu.memory_space<vmem>>, %arg4: memref<1x128xf32, #tpu.memory_space<vmem>>, %arg5: memref<8x128xf32, #tpu.memory_space<vmem>>) attributes {dimension_semantics = [#tpu.dimension_semantics<parallel>], iteration_bounds = array<i64: 1>, scalar_prefetch = 0 : i64, scratch_operands = 0 : i64, tpu.core_type = #tpu.core_type<tc>, window_params = [{transform_indices = @transform_0, window_bounds = array<i64: 8, 1>}, {transform_indices = @transform_1, window_bounds = array<i64: 8, 1>}, {pipeline_mode = #tpu.pipeline_mode<synchronous>, transform_indices = @transform_2, window_bounds = array<i64: 1, 128>}, {pipeline_mode = #tpu.pipeline_mode<synchronous>, transform_indices = @transform_3, window_bounds = array<i64: 1, 128>}, {transform_indices = @transform_4, window_bounds = array<i64: 8, 128>}]} {
    %c0 = arith.constant 0 : index
    %c0_0 = arith.constant 0 : index
    %0 = vector.load %arg1[%c0, %c0_0] : memref<8x1xf32, #tpu.memory_space<vmem>>, vector<8x1xf32>
    %1 = vector.shape_cast %0 : vector<8x1xf32> to vector<8x1xf32>
    %2 = vector.broadcast %1 : vector<8x1xf32> to vector<8x128xf32>
    %3 = tpu.iota {dimensions = array<i32: 1>} : vector<8x128xi32>
    %c64_i32 = arith.constant 64 : i32
    %4 = vector.broadcast %c64_i32 : i32 to vector<8x128xi32>
    %5 = arith.cmpi sge, %3, %4 : vector<8x128xi32>
    %c0_1 = arith.constant 0 : index
    %c0_2 = arith.constant 0 : index
    %6 = vector.load %arg2[%c0_1, %c0_2] : memref<8x1xf32, #tpu.memory_space<vmem>>, vector<8x1xf32>
    %7 = vector.shape_cast %6 : vector<8x1xf32> to vector<8x1xf32>
    %8 = vector.broadcast %7 : vector<8x1xf32> to vector<8x128xf32>
    %9 = arith.select %5, %8, %2 : vector<8x128xi1>, vector<8x128xf32>
    %c0_3 = arith.constant 0 : index
    %c0_4 = arith.constant 0 : index
    %10 = vector.load %arg3[%c0_3, %c0_4] : memref<1x128xf32, #tpu.memory_space<vmem>>, vector<1x128xf32>
    %11 = vector.broadcast %10 : vector<1x128xf32> to vector<8x128xf32>
    %12 = arith.mulf %9, %11 : vector<8x128xf32>
    %c0_5 = arith.constant 0 : index
    %c0_6 = arith.constant 0 : index
    %13 = vector.load %arg4[%c0_5, %c0_6] : memref<1x128xf32, #tpu.memory_space<vmem>>, vector<1x128xf32>
    %14 = vector.broadcast %13 : vector<1x128xf32> to vector<8x128xf32>
    %15 = arith.addf %12, %14 : vector<8x128xf32>
    %16 = math.sin %15 : vector<8x128xf32>
    %c0_7 = arith.constant 0 : index
    %c0_8 = arith.constant 0 : index
    %17 = vector.load %arg5[%c0_7, %c0_8] : memref<8x128xf32, #tpu.memory_space<vmem>>, vector<8x128xf32>
    tpu.vector_store %arg5[%c0_7, %c0_8], %16 {strides = array<i32>} : memref<8x128xf32, #tpu.memory_space<vmem>>, vector<8x128xf32>,
    return
  }
  func.func @transform_0(%arg0: i32) -> (i32, i32) {
    %c0_i32 = arith.constant 0 : i32
    %c0_i32_0 = arith.constant 0 : i32
    return %arg0, %c0_i32 : i32, i32
  }
  func.func @transform_1(%arg0: i32) -> (i32, i32) {
    %c0_i32 = arith.constant 0 : i32
    %c0_i32_0 = arith.constant 0 : i32
    return %arg0, %c0_i32 : i32, i32
  }
  func.func @transform_2(%arg0: i32) -> (i32, i32) {
    %c0_i32 = arith.constant 0 : i32
    %c0_i32_0 = arith.constant 0 : i32
    %c0_i32_1 = arith.constant 0 : i32
    return %c0_i32, %c0_i32_0 : i32, i32
  }
  func.func @transform_3(%arg0: i32) -> (i32, i32) {
    %c0_i32 = arith.constant 0 : i32
    %c0_i32_0 = arith.constant 0 : i32
    %c0_i32_1 = arith.constant 0 : i32
    return %c0_i32, %c0_i32_0 : i32, i32
  }
  func.func @transform_4(%arg0: i32) -> (i32, i32) {
    %c0_i32 = arith.constant 0 : i32
    %c0_i32_0 = arith.constant 0 : i32
    return %arg0, %c0_i32 : i32, i32
  }
}

</mosaic_0001>

<bundles_post_ra>
// kernel: tpu_custom_call.1
= control target key start
LH: loop header
LB: loop body
LE: loop exit
PB: predicated region body
PF: predicated region fallthrough
CT: control target
= control target key end

     0   :  { %v256_v1 = vmov 0   ;;  %s363_s0 = inlined_call_operand.vmem [shape: f32[8,1], index: 0, kind: input, shape index: {}]   ;;  %s364_s1 = inlined_call_operand.vmem [shape: f32[8,1], index: 1, kind: input, shape index: {}]   ;;  %s365_s2 = inlined_call_operand.vmem [shape: f32[1,128], index: 2, kind: input, shape index: {}]   ;;  %s366_s3 = inlined_call_operand.vmem [shape: f32[1,128], index: 3, kind: input, shape index: {}]   ;;  %s367_s4 = inlined_call_operand.hbm [shape: f32[8,128], index: 4, kind: output, shape index: {}]  }
   0x1   :  { %v18_v0 = vld [vmem:[%s363_s0] sm:$0xff]  ;;  %227 = vset.pattern.permute.xlu0 %v256_v1 }
   0x2   :  { %9 = vsyncpa [#allocation3], 0  ;;  %21 = vperm.xlu0 %227, %v18_v0   ;;  %v27_v2 = vld [vmem:[%s364_s1] sm:$0xff]  ;;  %v24_v3 = vlaneseq  ;;  %v257_v23 = vmov 2102212464   ;;  %s263_s1 = smov [#allocation2]  }
   0x3   :  { %v228_v6 = vld [vmem:[%s365_s2] ss:$0 sm:$0xff]  ;;  %v258_v25 = vmov 920167782   ;;  %v259_v28 = vmov 1326507024  }
   0x4   :  { %v25_v5 = vand.u32 127, %v24_v3  ;;  %v229_v7 = vld [vmem:[%s366_s3] ss:$0 sm:$0xff]  ;;  %v260_v30 = vmov 683565275   ;;  %s205_s2 = sshll.u32 %s263_s1, 4  ;;  %s206_s2 = int_to_ptr.vmem [resolvable:$true] %s205_s2 }
   0x5   :  { %v261_v32 = vmov 2475754826   ;;  %v262_v35 = vmov 2131351028   ;;  %s207_s23 = sshll.u32 %s367_s4, 4  ;;  %s208_s23 = int_to_ptr.hbm [resolvable:$true] %s207_s23 }
   0x6   :  { %vm26_vm0 = vcmp.ge.s32.totalorder %v25_v5, 64 }
   0xa   :  { %30 = vperm.xlu0 %227, %v27_v2  }
  0x74   :  { %v22_v4 = vpop.permute.xlu0 %21 }
  0x7c   :  { %v31_v8 = vpop.permute.xlu0 %30 }
  0x7d   :  { %v33_v9 = vsel %vm26_vm0, %v31_v8, %v22_v4 }
  0x7e   :  { %v38_v10 = vmul.f32 %v228_v6, %v33_v9 }
  0x80   :  { %v302_v11 = vadd.f32 %v229_v7, %v38_v10 }
  0x82   :  { %v47_v12 = vand.u32 2139095040, %v302_v11  ;;  %v44_v15 = vand.u32 2147483647, %v302_v11  ;;  %vm46_vm13 = vcmp.lt.s32.totalorder %v302_v11, 0 }
  0x84   :  { %v48_v13 = vshrl.u32 %v47_v12, 23  ;;  %v51_v17 = vand.u32 8388607, %v44_v15  ;;  %vm45_vm14 = vcmp.le.f32.partialorder %v44_v15, 0.7853982 }
  0x86   :  { %v216_v14 = vadd.s32 4294967169, %v48_v13  ;;  %v52_v21 = vor.u32 8388608, %v51_v17 }
  0x88   :  { %v54_v16 = vadd.s32 1, %v216_v14  ;;  %v317_v42 = vshll.u32 %v52_v21, 8 }
  0x8a   :  { %vm55_vm1 = vcmp.gt.s32.totalorder %v54_v16, 0  ;;  %v93_v52 = vand.u32 65535, %v317_v42  ;;  %v94_v54 = vshrl.u32 %v317_v42, 16 }
  0x8b   :  { %v56_v18 = vsel %vm55_vm1, %v54_v16, 0 }
  0x8c   :  { %v58_v19 = vand.u32 31, %v56_v18  ;;  %v310_v22 = vshrl.u32 %v56_v18, 5 }
  0x8e   :  { %v308_v20 = vsub.s32 32, %v58_v19  ;;  %v70_v24 = vshll.u32 %v257_v23, %v58_v19  ;;  %v73_v26 = vshll.u32 %v258_v25, %v58_v19  ;;  %v61_v31 = vshll.u32 %v260_v30, %v58_v19 }
  0x8f   :  { %v64_v34 = vshll.u32 %v261_v32, %v58_v19  ;;  %v67_v37 = vshll.u32 %v262_v35, %v58_v19  ;;  %vm79_vm2 = vcmp.lt.s32.totalorder %v310_v22, 4  ;;  %vm76_vm3 = vcmp.lt.s32.totalorder %v310_v22, 1 }
  0x90   :  { %v71_v27 = vshrl.u32 %v258_v25, %v308_v20  ;;  %v74_v29 = vshrl.u32 %v259_v28, %v308_v20  ;;  %v62_v33 = vshrl.u32 %v261_v32, %v308_v20  ;;  %v65_v36 = vshrl.u32 %v262_v35, %v308_v20 }
  0x91   :  { %v68_v38 = vshrl.u32 %v257_v23, %v308_v20  ;;  %vm78_vm4 = vcmp.lt.s32.totalorder %v310_v22, 3  ;;  %vm77_vm5 = vcmp.lt.s32.totalorder %v310_v22, 2  ;;  %v60_v16 = vshrl.u32 %v260_v30, %v308_v20 }
  0x92   :  { %v72_v39 = vor.u32 %v71_v27, %v70_v24  ;;  %v75_v40 = vor.u32 %v74_v29, %v73_v26  ;;  %v63_v41 = vor.u32 %v62_v33, %v61_v31  ;;  %v66_v43 = vor.u32 %v65_v36, %v64_v34 }
  0x93   :  { %v69_v44 = vor.u32 %v68_v38, %v67_v37 }
  0x94   :  { %v85_v45 = vsel %vm79_vm2, %v72_v39, 920167782  ;;  %v89_v46 = vsel %vm79_vm2, %v75_v40, 1326507024  ;;  %v84_v47 = vsel %vm76_vm3, %v63_v41, %v66_v43  ;;  %v80_v24 = vsel %vm76_vm3, %v60_v16, %v63_v41 }
  0x95   :  { %v86_v48 = vsel %vm78_vm4, %v69_v44, %v85_v45  ;;  %v88_v49 = vsel %vm76_vm3, %v66_v43, %v69_v44  ;;  %v90_v51 = vsel %vm78_vm4, %v72_v39, %v89_v46  ;;  %v81_v12 = vsel %vm79_vm2, %v69_v44, 2102212464 }
  0x96   :  { %v87_v50 = vsel %vm77_vm5, %v84_v47, %v86_v48  ;;  %v91_v53 = vsel %vm77_vm5, %v88_v49, %v90_v51  ;;  %v82_v25 = vsel %vm78_vm4, %v66_v43, %v81_v12  ;;  %vm187_vm2 = vweird.f32 %v302_v11 }
  0x97   :  { %v117_v55 = vand.u32 65535, %v87_v50  ;;  %v118_v56 = vshrl.u32 %v87_v50, 16  ;;  %v95_v57 = vand.u32 65535, %v91_v53  ;;  %v96_v58 = vshrl.u32 %v91_v53, 16 }
  0x98   :  { %v83_v30 = vsel %vm77_vm5, %v80_v24, %v82_v25 }
  0x99   :  { %v120_v59 = vmul.u32 %v118_v56, %v93_v52  ;;  %v121_v60 = vmul.u32 %v117_v55, %v94_v54  ;;  %v98_v61 = vmul.u32 %v96_v58, %v93_v52  ;;  %v99_v62 = vmul.u32 %v95_v57, %v94_v54 }
  0x9a   :  { %v119_v63 = vmul.u32 %v117_v55, %v93_v52  ;;  %v97_v2 = vmul.u32 %v95_v57, %v93_v52  ;;  %v122_v4 = vmul.u32 %v118_v56, %v94_v54  ;;  %v100_v5 = vmul.u32 %v96_v58, %v94_v54 }
  0x9b   :  { %v123_v0 = vshll.u32 %v120_v59, 16  ;;  %v101_v3 = vshll.u32 %v98_v61, 16  ;;  %v125_v6 = vshll.u32 %v121_v60, 16  ;;  %v103_v8 = vshll.u32 %v99_v62, 16 }
  0x9c   :  { %v124_v21 = vshrl.u32 %v120_v59, 16  ;;  %v102_v26 = vshrl.u32 %v98_v61, 16  ;;  %v126_v28 = vshrl.u32 %v121_v60, 16  ;;  %v104_v31 = vshrl.u32 %v99_v62, 16 }
  0x9d   :  { %vm127_vm6 = vc.u32 %v119_v63, %v123_v0  ;;  %v129_v7 = vadd.s32 %v123_v0, %v119_v63  ;;  %vm105_vm7 = vc.u32 %v97_v2, %v101_v3  ;;  %v107_v9 = vadd.s32 %v101_v3, %v97_v2 }
  0x9e   :  { %v128_v10 = vsel %vm127_vm6, 1, %v256_v1  ;;  %v106_v13 = vsel %vm105_vm7, 1, %v256_v1  ;;  %v137_v35 = vmul.u32 %v317_v42, %v83_v30 }
  0x9f   :  { %v130_v14 = vadd.s32 %v128_v10, %v122_v4  ;;  %vm131_vm8 = vc.u32 %v129_v7, %v125_v6  ;;  %v108_v17 = vadd.s32 %v106_v13, %v100_v5  ;;  %vm109_vm9 = vc.u32 %v107_v9, %v103_v8 }
  0xa0   :  { %v132_v18 = vsel %vm131_vm8, 1, %v256_v1  ;;  %v110_v19 = vsel %vm109_vm9, 1, %v256_v1  ;;  %v133_v1 = vadd.s32 %v129_v7, %v125_v6 }
  0xa1   :  { %v134_v23 = vadd.s32 %v132_v18, %v130_v14  ;;  %v112_v27 = vadd.s32 %v110_v19, %v108_v17 }
  0xa3   :  { %v135_v29 = vadd.s32 %v134_v23, %v124_v21  ;;  %v113_v20 = vadd.s32 %v112_v27, %v102_v26 }
  0xa5   :  { %v136_v32 = vadd.s32 %v135_v29, %v126_v28  ;;  %v114_v33 = vadd.s32 %v113_v20, %v104_v31 }
  0xa7   :  { %v140_v34 = vadd.s32 1, %v136_v32  ;;  %vm139_vm10 = vc.u32 %v114_v33, %v133_v1  ;;  %v138_v47 = vadd.s32 %v133_v1, %v114_v33 }
  0xa9   :  { %v141_v36 = vsel %vm139_vm10, %v140_v34, %v136_v32 }
  0xaa   :  { %v142_v37 = vadd.s32 %v141_v36, %v137_v35 }
  0xac   :  { %v143_v38 = vadd.s32 536870912, %v142_v37 }
  0xae   :  { %v144_v39 = vshrl.u32 %v143_v38, 30 }
  0xb0   :  { %v145_v40 = vshll.u32 %v144_v39, 30  ;;  %v168_v60 = vsub.s32 4, %v144_v39 }
  0xb2   :  { %v146_v41 = vsub.s32 %v142_v37, %v145_v40  ;;  %v169_v2 = vsel %vm46_vm13, %v168_v60, %v144_v39 }
  0xb3   :  { %v171_v5 = vsel %vm45_vm14, 0, %v169_v2 }
  0xb4   :  { %vm147_vm11 = vcmp.lt.s32.totalorder %v146_v41, 0  ;;  %v148_v43 = vsub.s32 0, %v146_v41  ;;  %v188_v10 = vadd.s32 3, %v171_v5 }
  0xb6   :  { %v149_v44 = vsel %vm147_vm11, %v148_v43, %v146_v41  ;;  %v189_v16 = vand.u32 3, %v188_v10 }
  0xb7   :  { %v150_v45 = vclz %v149_v44 }
  0xb8   :  { %vm191_vm15 = vcmp.eq.s32.totalorder %v189_v16, 0  ;;  %vm194_vm0 = vcmp.eq.s32.totalorder %v189_v16, 2  ;;  %vm190_vm1 = vcmp.lt.s32.totalorder %v189_v16, 2 }
  0xb9   :  { %v217_v46 = vadd.s32 4294967294, %v150_v45 }
  0xbb   :  { %vm218_vm12 = vcmp.lt.s32.totalorder %v217_v46, 0 }
  0xbc   :  { %v153_v22 = vsel %vm218_vm12, 0, %v217_v46 }
  0xbd   :  { %v154_v48 = vsub.s32 32, %v153_v22  ;;  %v158_v49 = vsub.s32 4294967266, %v153_v22  ;;  %v155_v50 = vshll.u32 %v146_v41, %v153_v22 }
  0xbf   :  { %v156_v51 = vshrl.u32 %v138_v47, %v154_v48  ;;  %v159_v42 = vadd.s32 127, %v158_v49 }
  0xc1   :  { %v157_v52 = vor.u32 %v156_v51, %v155_v50  ;;  %v160_v53 = vshll.u32 %v159_v42, 23 }
  0xc3   :  { %v161_v54 = vor.u32 4788187, %v160_v53  ;;  %v164_v56 = vcvt.s32.f32 %v157_v52 }
  0xc5   :  { %v162_v55 = vand.u32 2147483647, %v161_v54 }
  0xc7   :  { %v165_v57 = vmul.f32 %v164_v56, %v162_v55 }
  0xc9   :  { %v166_v58 = vxor.u32 2147483648, %v165_v57 }
  0xcb   :  { %v167_v59 = vsel %vm46_vm13, %v166_v58, %v165_v57 }
  0xcc   :  { %v170_v61 = vsel %vm45_vm14, %v302_v11, %v167_v59 }
  0xcd   :  { %v172_v62 = vmul.f32 %v170_v61, %v170_v61 }
  0xcf   :  { %v173_v63 = vmul.f32 -0.001358992, %v172_v62  ;;  %v180_v0 = vmul.f32 -0.00019511016, %v172_v62 }
  0xd1   :  { %v174_v3 = vadd.f32 0.041655596, %v173_v63  ;;  %v181_v4 = vadd.f32 0.008332121, %v180_v0 }
  0xd3   :  { %v175_v6 = vmul.f32 %v174_v3, %v172_v62  ;;  %v182_v7 = vmul.f32 %v181_v4, %v172_v62 }
  0xd5   :  { %v176_v8 = vadd.f32 -0.4999988, %v175_v6  ;;  %v183_v9 = vadd.f32 -0.16666654, %v182_v7 }
  0xd7   :  { %v177_v12 = vmul.f32 %v176_v8, %v172_v62  ;;  %v184_v13 = vmul.f32 %v183_v9, %v172_v62 }
  0xd9   :  { %v178_v14 = vadd.f32 1.0, %v177_v12  ;;  %v185_v15 = vadd.f32 1.0, %v184_v13 }
  0xdb   :  { %v186_v17 = vmul.f32 %v185_v15, %v170_v61  ;;  %v195_v18 = vxor.u32 2147483648, %v178_v14 }
  0xdd   :  { %v192_v19 = vxor.u32 2147483648, %v186_v17  ;;  %v196_v23 = vsel %vm194_vm0, %v195_v18, %v186_v17 }
  0xdf   :  { %v193_v21 = vsel %vm191_vm15, %v178_v14, %v192_v19 }
  0xe0   :  { %v197_v24 = vsel %vm190_vm1, %v193_v21, %v196_v23 }
  0xe1   :  { %v198_v25 = vsel %vm187_vm2, nan, %v197_v24 }
  0xe2   :  { %199 = vst [vmem:[#allocation2] sm:$0xff] %v198_v25 }
  0xe3   :  { %210 = dma.vmem_to_hbm [thread:$0]  %s206_s2, 128, %s208_s23, [#allocation3]  }
  0xe4   :  { %254 = dma.done.wait [#allocation3], 128  }
  0xe5   :  { %255 = vsyncadd [#allocation3], 4294967168 }
  0xe6   :  { %215 = vsyncpa [#allocation3], 1 }

</bundles_post_ra>
